<compile_context>
chip_gen: v5e
topology: v5e:2x2
jax: 0.10.0
libtpu: 0.0.40
codegen_flags: <defaults>
</compile_context>

<pallas_src>
import functools

import jax
import jax.numpy as jnp
from jax.experimental import pallas as pl
from jax.experimental.pallas import tpu as pltpu


def _make_ltq_kernel(n_val):
    def kernel(params_ref, x_ref, o_ref):
        # params_ref (SMEM f32):
        #   [0]                   scale1
        #   [1 .. n_val]          thresholds (strictly increasing; a_pos >= eps)
        #   [1+n_val .. 2*n_val]  levels, pre-multiplied by scale2 in the wrapper
        scale1 = params_ref[0]
        xs = x_ref[...].astype(jnp.float32) * scale1
        out = jnp.zeros_like(xs)
        # n_val is tiny & static -> fully unrolled VPU compare/select chain.
        # Thresholds increase monotonically, so the sequential overwrite
        # reproduces the PyTorch loop exactly.
        for i in range(n_val):
            out = jnp.where(xs > params_ref[1 + i], params_ref[1 + n_val + i], out)
        o_ref[...] = out.astype(o_ref.dtype)

    return kernel


# ~1M elements per block (4 MiB f32 I/O per input tile). Double-buffered in+out
# plus a few f32 block temporaries stays well inside the explicit vmem limit
# below on every generation (v5e/v6e: 128 MiB physical VMEM, v7x: 64 MiB).
_TARGET_TILE_ELEMS = 1 << 20


def _pick_lane_width(total):
    """Largest lane width (multiple of 128) that divides `total` exactly."""
    for lb in (512, 256, 128):
        if total % lb == 0:
            return lb, False
    return 512, True  # rare: element count not a multiple of 128


def ltq_forward(x, a, start, scale1, scale2, *, num_bits, eps=1e-3):
    """LTQ forward. x: (N, C, H, W); returns same shape/dtype as x."""
    n_val = 2 ** num_bits - 1
    interval = 2.0 / n_val

    # O(n_val) parameter prep, done once outside the kernel.
    a_pos = jnp.maximum(jnp.asarray(a, jnp.float32).reshape(-1), eps)
    csum = jnp.concatenate([jnp.zeros((1,), jnp.float32), jnp.cumsum(a_pos)[:-1]])
    thre = jnp.asarray(start, jnp.float32).reshape(-1)[:1] + csum + 0.5 * a_pos
    # Fold scale2 into the levels (safe: the 'below first threshold' value is 0).
    levels = (interval * jnp.arange(1, n_val + 1, dtype=jnp.float32)) \
        * jnp.asarray(scale2, jnp.float32).reshape(-1)[:1]
    params = jnp.concatenate([
        jnp.asarray(scale1, jnp.float32).reshape(-1)[:1],
        thre,
        levels,
    ])

    orig_shape = x.shape
    total = x.size
    xf = x.reshape(-1)  # free for a contiguous activation tensor

    # Lane-dense flat slab: (rows, LB), LB a multiple of 128 dividing the total
    # element count -> no per-row lane padding, unmasked vst stores.
    LB, needs_pad = _pick_lane_width(total)
    if needs_pad:
        # TODO(synk): rare fallback (total not a multiple of 128) costs one
        # small pad + one slice round trip over HBM.
        total_pad = pl.cdiv(total, LB) * LB
        xf = jnp.pad(xf, (0, total_pad - total))
    else:
        total_pad = total
    rows = total_pad // LB
    x2 = xf.reshape(rows, LB)

    itemsize = jnp.dtype(x.dtype).itemsize
    r_target = max(8, (_TARGET_TILE_ELEMS // LB) // 8 * 8)
    if rows < 8:
        r_blk = rows  # block == full array dim: allowed by Mosaic tiling rules
    else:
        r_blk = min(r_target, (rows // 8) * 8)
        if rows >= 16:
            # Keep at least two row blocks so ("parallel",) can shard the grid
            # across both TensorCores on v7x.
            half = max(8, (pl.cdiv(rows, 2) // 8) * 8)
            r_blk = min(r_blk, half)
    # Edge block (when r_blk does not divide rows) is masked by Pallas:
    # reads past the end are garbage (harmless here), OOB writes are dropped.
    grid = (pl.cdiv(rows, r_blk),)

    # Explicit VMEM budget: double-buffered in+out tiles plus f32 block temps.
    block_io = r_blk * LB * itemsize
    block_f32 = r_blk * LB * 4
    vmem_limit = int(min(max(4 * block_io + 6 * block_f32 + (2 << 20), 16 << 20),
                         56 << 20))

    out2 = pl.pallas_call(
        _make_ltq_kernel(n_val),
        out_shape=jax.ShapeDtypeStruct((rows, LB), x.dtype),
        grid_spec=pltpu.PrefetchScalarGridSpec(
            num_scalar_prefetch=1,  # params -> SMEM once, resident for all steps
            grid=grid,
            in_specs=[pl.BlockSpec((r_blk, LB), lambda r, p: (r, 0))],
            out_specs=pl.BlockSpec((r_blk, LB), lambda r, p: (r, 0)),
        ),
        compiler_params=pltpu.CompilerParams(
            dimension_semantics=("parallel",),
            vmem_limit_bytes=vmem_limit,
        ),
        # NOTE: input_output_aliases={1: 0} was considered but intentionally
        # omitted: it forces a defensive full copy whenever x is a non-donated
        # entry parameter (as in this demo), which costs more than it saves.
    )(params, x2)

    if needs_pad:
        out2 = out2.reshape(-1)[:total]
    return out2.reshape(orig_shape)


if __name__ == "__main__":
    key = jax.random.PRNGKey(0)
    N, C, H, W = 2, 4, 16, 16
    num_bits = 2
    n_val = 2 ** num_bits - 1
    interval = 2.0 / n_val

    kx, ka = jax.random.split(key)
    x = jax.random.normal(kx, (N, C, H, W), dtype=jnp.float32)

    # PyTorch inits: start=0, a=[interval]*n_val, scales=1.  Perturb slightly so
    # every quantization level / threshold is actually exercised.
    start = jnp.array([0.05], dtype=jnp.float32)
    a = jnp.full((n_val,), interval, dtype=jnp.float32) \
        + 0.05 * jax.random.normal(ka, (n_val,), dtype=jnp.float32)
    scale1 = jnp.array([1.1], dtype=jnp.float32)
    scale2 = jnp.array([0.9], dtype=jnp.float32)

    ltq = jax.jit(functools.partial(ltq_forward, num_bits=num_bits))
    out = jax.block_until_ready(ltq(x, a, start, scale1, scale2))

    # Pure-JAX reference mirroring the PyTorch forward.
    # TODO(synk): the .detach() straight-through x_backward branch is
    # gradient-only; the forward value is exactly x_forward * scale2.
    def ltq_ref(x, a, start, scale1, scale2, num_bits, eps=1e-3):
        n_val = 2 ** num_bits - 1
        interval = 2.0 / n_val
        a_pos = jnp.maximum(a, eps)
        xs = x * scale1
        thre = start[0] + a_pos[0] / 2.0
        x_fwd = jnp.where(xs > thre, jnp.float32(interval), jnp.float32(0.0))
        for i in range(1, n_val):
            thre = thre + a_pos[i - 1] / 2.0 + a_pos[i] / 2.0
            x_fwd = jnp.where(xs > thre, jnp.float32((i + 1) * interval), x_fwd)
        return x_fwd * scale2

    ref = ltq_ref(x, a, start, scale1, scale2, num_bits)
    assert out.shape == x.shape and out.dtype == x.dtype
    assert jnp.allclose(out, ref, atol=1e-5), "mismatch vs reference"

    print("KERNEL_OK")
</pallas_src>

<mosaic_0001>
module attributes {stable_mosaic.version = 11 : i64} {
  func.func @kernel(%arg0: i32, %arg1: memref<7xf32, #tpu.memory_space<smem>>, %arg2: memref<4x512xf32, #tpu.memory_space<vmem>>, %arg3: memref<4x512xf32, #tpu.memory_space<vmem>>) attributes {dimension_semantics = [#tpu.dimension_semantics<parallel>], iteration_bounds = array<i64: 1>, scalar_prefetch = 1 : i64, scratch_operands = 0 : i64, tpu.core_type = #tpu.core_type<tc>, window_params = [{transform_indices = @transform_0, window_bounds = array<i64: 4, 512>}, {transform_indices = @transform_1, window_bounds = array<i64: 4, 512>}]} {
    %c0 = arith.constant 0 : index
    %0 = memref.load %arg1[%c0] : memref<7xf32, #tpu.memory_space<smem>>
    %c0_0 = arith.constant 0 : index
    %c0_1 = arith.constant 0 : index
    %1 = vector.load %arg2[%c0_0, %c0_1] : memref<4x512xf32, #tpu.memory_space<vmem>>, vector<4x512xf32>
    %2 = vector.broadcast %0 : f32 to vector<4x512xf32>
    %3 = arith.mulf %1, %2 : vector<4x512xf32>
    %cst = arith.constant 0.000000e+00 : f32
    %4 = vector.broadcast %cst : f32 to vector<4x512xf32>
    %c1 = arith.constant 1 : index
    %5 = memref.load %arg1[%c1] : memref<7xf32, #tpu.memory_space<smem>>
    %6 = vector.broadcast %5 : f32 to vector<4x512xf32>
    %7 = arith.cmpf ogt, %3, %6 : vector<4x512xf32>
    %c4 = arith.constant 4 : index
    %8 = memref.load %arg1[%c4] : memref<7xf32, #tpu.memory_space<smem>>
    %9 = vector.broadcast %8 : f32 to vector<4x512xf32>
    %10 = arith.select %7, %9, %4 : vector<4x512xi1>, vector<4x512xf32>
    %c2 = arith.constant 2 : index
    %11 = memref.load %arg1[%c2] : memref<7xf32, #tpu.memory_space<smem>>
    %12 = vector.broadcast %11 : f32 to vector<4x512xf32>
    %13 = arith.cmpf ogt, %3, %12 : vector<4x512xf32>
    %c5 = arith.constant 5 : index
    %14 = memref.load %arg1[%c5] : memref<7xf32, #tpu.memory_space<smem>>
    %15 = vector.broadcast %14 : f32 to vector<4x512xf32>
    %16 = arith.select %13, %15, %10 : vector<4x512xi1>, vector<4x512xf32>
    %c3 = arith.constant 3 : index
    %17 = memref.load %arg1[%c3] : memref<7xf32, #tpu.memory_space<smem>>
    %18 = vector.broadcast %17 : f32 to vector<4x512xf32>
    %19 = arith.cmpf ogt, %3, %18 : vector<4x512xf32>
    %c6 = arith.constant 6 : index
    %20 = memref.load %arg1[%c6] : memref<7xf32, #tpu.memory_space<smem>>
    %21 = vector.broadcast %20 : f32 to vector<4x512xf32>
    %22 = arith.select %19, %21, %16 : vector<4x512xi1>, vector<4x512xf32>
    %c0_2 = arith.constant 0 : index
    %c0_3 = arith.constant 0 : index
    %23 = vector.load %arg3[%c0_2, %c0_3] : memref<4x512xf32, #tpu.memory_space<vmem>>, vector<4x512xf32>
    tpu.vector_store %arg3[%c0_2, %c0_3], %22 {strides = array<i32>} : memref<4x512xf32, #tpu.memory_space<vmem>>, vector<4x512xf32>,
    return
  }
  func.func @transform_0(%arg0: i32, %arg1: memref<7xf32, #tpu.memory_space<smem>>) -> (i32, i32) {
    %c0_i32 = arith.constant 0 : i32
    %c0_i32_0 = arith.constant 0 : i32
    return %arg0, %c0_i32 : i32, i32
  }
  func.func @transform_1(%arg0: i32, %arg1: memref<7xf32, #tpu.memory_space<smem>>) -> (i32, i32) {
    %c0_i32 = arith.constant 0 : i32
    %c0_i32_0 = arith.constant 0 : i32
    return %arg0, %c0_i32 : i32, i32
  }
}

</mosaic_0001>

<bundles_post_ra>
// kernel: ltq_forward.1
= control target key start
LH: loop header
LB: loop body
LE: loop exit
PB: predicated region body
PF: predicated region fallthrough
CT: control target
= control target key end

     0   :  { %s74_s12 = smov [#allocation3]   ;;  %s105_s0 = inlined_call_operand.vmem [shape: f32[7], index: 0, kind: input, shape index: {}]   ;;  %s106_s1 = inlined_call_operand.vmem [shape: f32[4,512], index: 1, kind: input, shape index: {}]   ;;  %s107_s2 = inlined_call_operand.vmem [shape: f32[4,512], index: 2, kind: output, shape index: {}]  }
   0x1   :  { %s8_s11 = sshll.u32 %s105_s0, 4  ;;  %s9_s11 = int_to_ptr.vmem [resolvable:$true] %s8_s11 }
   0x2   :  { %11 = dma.vmem_to_smem %s9_s11, 16, %s74_s12, [#allocation2] }
   0x3   :  { %72 = dma.done.wait [#allocation2], 16 }
   0x4   :  { %73 = vsyncadd [#allocation2], 4294967280 }
   0x5   :  { %14 = sfence }
   0x6   :  { %s17_s13 = sld [smem:[#allocation3]]  ;;  %v18_v0 = vld [vmem:[%s106_s1] sm:$0xff]  ;;  %v19_v1 = vld [vmem:[%s106_s1 + $0x8] sm:$0xff] }
   0x7   :  { %s53_s14 = sld [smem:[#allocation3 + $0x1]] }
   0x8   :  { %s54_s15 = sld [smem:[#allocation3 + $0x4]] }
   0x9   :  { %s55_s16 = sld [smem:[#allocation3 + $0x2]] }
   0xa   :  { %s56_s19 = sld [smem:[#allocation3 + $0x5]] }
   0xb   :  { %s57_s0 = sld [smem:[#allocation3 + $0x3]] }
   0xc   :  { %v20_v2 = vstv %s17_s13  ;;  %s58_s22 = sld [smem:[#allocation3 + $0x6]] }
   0xd   :  { %v21_v3 = vmul.f32 %v20_v2, %v18_v0  ;;  %v24_v4 = vstv %s53_s14  ;;  %v22_v5 = vmul.f32 %v20_v2, %v19_v1 }
   0xe   :  { %v28_v6 = vstv %s54_s15 }
   0xf   :  { %vm25_vm0 = vcmp.gt.f32.partialorder %v21_v3, %v24_v4  ;;  %v32_v7 = vstv %s55_s16  ;;  %vm26_vm1 = vcmp.gt.f32.partialorder %v22_v5, %v24_v4 }
  0x10   :  { %v29_v8 = vsel %vm25_vm0, %v28_v6, 0.0  ;;  %vm33_vm2 = vcmp.gt.f32.partialorder %v21_v3, %v32_v7  ;;  %v36_v9 = vstv %s56_s19  ;;  %v30_v10 = vsel %vm26_vm1, %v28_v6, 0.0 }
  0x11   :  { %v37_v11 = vsel %vm33_vm2, %v36_v9, %v29_v8  ;;  %v40_v12 = vstv %s57_s0  ;;  %vm34_vm3 = vcmp.gt.f32.partialorder %v22_v5, %v32_v7 }
  0x12   :  { %vm41_vm4 = vcmp.gt.f32.partialorder %v21_v3, %v40_v12  ;;  %v44_v13 = vstv %s58_s22  ;;  %v38_v14 = vsel %vm34_vm3, %v36_v9, %v30_v10  ;;  %vm42_vm5 = vcmp.gt.f32.partialorder %v22_v5, %v40_v12 }
  0x13   :  { %v45_v15 = vsel %vm41_vm4, %v44_v13, %v37_v11  ;;  %v46_v16 = vsel %vm42_vm5, %v44_v13, %v38_v14 }
  0x14   :  { %47 = vst [vmem:[%s107_s2] sm:$0xff] %v45_v15 }
  0x15   :  { %48 = vst [vmem:[%s107_s2 + $0x8] sm:$0xff] %v46_v16 }

</bundles_post_ra>
